<compile_context>
chip_gen: v7x
topology: tpu7x:2x2x1
jax: 0.10.0
libtpu: 0.0.40
codegen_flags: <defaults>
</compile_context>

<pallas_src>
import jax
import jax.numpy as jnp
from jax.experimental import pallas as pl
from jax.experimental.pallas import tpu as pltpu


H = 10  # trunk hidden size, fixed by the module


def _round_up(x, m):
    return ((x + m - 1) // m) * m


def _model_kernel(s_ref, wf_ref, bf_ref, out_ref):
    A = (out_ref.shape[1] - 1) // 2

    # One fused matmul: columns [0:A] are policy logits, column A is the value
    # pre-activation.
    z = jnp.dot(s_ref[...], wf_ref[...],
                preferred_element_type=jnp.float32) + bf_ref[...]
    logits = z[:, :A]
    v_pre = z[:, A:A + 1]

    # ---- log-softmax over actions; exponentials computed once and reused.
    m = jnp.max(logits, axis=1, keepdims=True)
    shifted = logits - m
    p = jnp.exp(shifted)
    denom = jnp.sum(p, axis=1, keepdims=True)
    inv_denom = pl.reciprocal(denom)        # exact; not the bottleneck here

    # ---- single fused output slab: [pi | logpi | V]
    out_ref[:, :A] = p * inv_denom
    out_ref[:, A:2 * A] = shifted - jnp.log(denom)
    out_ref[:, 2 * A:] = jnp.tanh(v_pre)


def fuse_params(params):
    """Fold trunk + both heads into one affine map. Call once, outside hot loops."""
    w_cat = jnp.concatenate([params["w_pol"], params["w_val"]], axis=1)   # (H, A+1)
    b_cat = jnp.concatenate([params["b_pol"], params["b_val"]], axis=1)   # (1, A+1)
    w_full = params["w_trunk"] @ w_cat                                    # (D, A+1)
    b_full = params["b_trunk"] @ w_cat + b_cat                            # (1, A+1)
    return w_full, b_full


def _choose_tb(B, D, A, tb_req, vmem_budget_bytes):
    """Pick a batch tile: multiple of 8, within the VMEM budget, >=2 grid steps."""
    B8 = _round_up(B, 8)
    # f32 bytes per batch row in VMEM: double-buffered input tile + output slab.
    row_bytes = 4 * 2 * (D + (2 * A + 1))
    tb_cap = max(8, (vmem_budget_bytes // row_bytes) // 8 * 8)
    tb = min(_round_up(max(tb_req, 8), 8), tb_cap, B8)
    # Keep at least 2 grid steps when the batch allows it (v7x megacore sharding).
    if tb >= B8 and B8 >= 16:
        tb = _round_up((B8 + 1) // 2, 8)
    return tb


def model_forward(s, params, *, tb=1024, fused=None,
                  vmem_budget_bytes=8 * 1024 * 1024):
    """Forward pass, tiled over the batch dimension."""
    B, D = s.shape
    A = params["w_pol"].shape[1]
    if fused is None:
        fused = fuse_params(params)
    w_full, b_full = fused

    tb = _choose_tb(B, D, A, tb, vmem_budget_bytes)
    Bp = _round_up(B, tb)
    if Bp != B:
        s = jnp.pad(s, ((0, Bp - B), (0, 0)))
    grid = (Bp // tb,)

    n_out = 2 * A + 1
    out = pl.pallas_call(
        _model_kernel,
        out_shape=jax.ShapeDtypeStruct((Bp, n_out), jnp.float32),
        grid=grid,
        in_specs=[
            pl.BlockSpec((tb, D), lambda i: (i, 0)),       # s tile           (tb, D)
            pl.BlockSpec((D, A + 1), lambda i: (0, 0)),    # fused W, VMEM-resident
            pl.BlockSpec((1, A + 1), lambda i: (0, 0)),    # fused b, VMEM-resident
        ],
        out_specs=pl.BlockSpec((tb, n_out), lambda i: (i, 0)),
        compiler_params=pltpu.CompilerParams(
            dimension_semantics=("parallel",),
            vmem_limit_bytes=32 * 1024 * 1024),
    )(s, w_full, b_full)

    pi = out[:B, :A]
    logpi = out[:B, A:2 * A]
    v = out[:B, 2 * A:2 * A + 1]
    return dict(pi=pi, logpi=logpi, V=v)


def init_params(key, dim, num_action):
    """Deterministic synthetic parameters (shapes match the PyTorch module)."""
    k1, k2, k3, k4, k5, k6 = jax.random.split(key, 6)
    scale_t = 1.0 / jnp.sqrt(dim)
    scale_h = 1.0 / jnp.sqrt(H)
    return dict(
        w_trunk=jax.random.uniform(k1, (dim, H), jnp.float32, -scale_t, scale_t),
        b_trunk=jax.random.uniform(k2, (1, H), jnp.float32, -scale_t, scale_t),
        w_pol=jax.random.uniform(k3, (H, num_action), jnp.float32, -scale_h, scale_h),
        b_pol=jax.random.uniform(k4, (1, num_action), jnp.float32, -scale_h, scale_h),
        w_val=jax.random.uniform(k5, (H, 1), jnp.float32, -scale_h, scale_h),
        b_val=jax.random.uniform(k6, (1, 1), jnp.float32, -scale_h, scale_h),
    )


def reference_forward(s, p):
    rep = s @ p["w_trunk"] + p["b_trunk"]
    logits = rep @ p["w_pol"] + p["b_pol"]
    logpi = jax.nn.log_softmax(logits, axis=1)
    v = jnp.tanh(rep @ p["w_val"] + p["b_val"])
    return dict(pi=jnp.exp(logpi), logpi=logpi, V=v)


if __name__ == "__main__":
    B, D, A = 256, 32, 16  # batch, params['dim'], params['num_action']

    key = jax.random.PRNGKey(0)
    k_s, k_p = jax.random.split(key)
    s = jax.random.normal(k_s, (B, D), jnp.float32)
    params = init_params(k_p, D, A)

    # _choose_tb picks tb=128 here -> grid of 2 pipelined "parallel" steps.
    out = model_forward(s, params)
    jax.block_until_ready(out)

    ref = reference_forward(s, params)
    for name in ("pi", "logpi", "V"):
        assert out[name].shape == ref[name].shape, name
        assert jnp.allclose(out[name], ref[name], atol=1e-5, rtol=1e-5), name

    print("KERNEL_OK")
</pallas_src>

<mosaic_0001>
module attributes {stable_mosaic.version = 11 : i64} {
  func.func @_model_kernel(%arg0: i32, %arg1: memref<128x32xf32, #tpu.memory_space<vmem>>, %arg2: memref<32x17xf32, #tpu.memory_space<vmem>>, %arg3: memref<1x17xf32, #tpu.memory_space<vmem>>, %arg4: memref<128x33xf32, #tpu.memory_space<vmem>>) attributes {dimension_semantics = [#tpu.dimension_semantics<parallel>], iteration_bounds = array<i64: 2>, scalar_prefetch = 0 : i64, scratch_operands = 0 : i64, tpu.core_type = #tpu.core_type<tc>, window_params = [{transform_indices = @transform_0, window_bounds = array<i64: 128, 32>}, {pipeline_mode = #tpu.pipeline_mode<synchronous>, transform_indices = @transform_1, window_bounds = array<i64: 32, 17>}, {pipeline_mode = #tpu.pipeline_mode<synchronous>, transform_indices = @transform_2, window_bounds = array<i64: 1, 17>}, {transform_indices = @transform_3, window_bounds = array<i64: 128, 33>}]} {
    %c0 = arith.constant 0 : index
    %c0_0 = arith.constant 0 : index
    %0 = vector.load %arg1[%c0, %c0_0] : memref<128x32xf32, #tpu.memory_space<vmem>>, vector<128x32xf32>
    %c0_1 = arith.constant 0 : index
    %c0_2 = arith.constant 0 : index
    %1 = vector.load %arg2[%c0_1, %c0_2] : memref<32x17xf32, #tpu.memory_space<vmem>>, vector<32x17xf32>
    %cst = arith.constant dense<0.000000e+00> : vector<128x17xf32>
    %2 = tpu.matmul %0, %1, %cst {dimension_numbers = #tpu.dot_dimension_numbers<[1], [0], [0], [1], [0, 0, 1, 1], [], []>} : vector<128x32xf32>, vector<32x17xf32>, vector<128x17xf32> -> vector<128x17xf32>
    %c0_3 = arith.constant 0 : index
    %c0_4 = arith.constant 0 : index
    %3 = vector.load %arg3[%c0_3, %c0_4] : memref<1x17xf32, #tpu.memory_space<vmem>>, vector<1x17xf32>
    %4 = vector.broadcast %3 : vector<1x17xf32> to vector<128x17xf32>
    %5 = arith.addf %2, %4 : vector<128x17xf32>
    %6 = vector.extract_strided_slice %5 {offsets = [0, 0], sizes = [128, 16], strides = [1, 1]} : vector<128x17xf32> to vector<128x16xf32>
    %7 = vector.extract_strided_slice %5 {offsets = [0, 16], sizes = [128, 1], strides = [1, 1]} : vector<128x17xf32> to vector<128x1xf32>
    %cst_5 = arith.constant dense<0xFF800000> : vector<128xf32>
    %8 = vector.multi_reduction <maximumf>, %6, %cst_5 [1] : vector<128x16xf32> to vector<128xf32>
    %9 = vector.shape_cast %8 : vector<128xf32> to vector<128x1xf32>
    %10 = vector.broadcast %9 : vector<128x1xf32> to vector<128x16xf32>
    %11 = arith.subf %6, %10 : vector<128x16xf32>
    %12 = math.exp %11 : vector<128x16xf32>
    %cst_6 = arith.constant dense<0.000000e+00> : vector<128xf32>
    %13 = vector.multi_reduction <add>, %12, %cst_6 [1] : vector<128x16xf32> to vector<128xf32>
    %14 = vector.shape_cast %13 : vector<128xf32> to vector<128x1xf32>
    %15 = tpu.reciprocal %14 : vector<128x1xf32> -> vector<128x1xf32>
    %16 = vector.broadcast %15 : vector<128x1xf32> to vector<128x16xf32>
    %17 = arith.mulf %12, %16 : vector<128x16xf32>
    %c0_7 = arith.constant 0 : index
    %c0_8 = arith.constant 0 : index
    %18 = vector.load %arg4[%c0_7, %c0_8] : memref<128x33xf32, #tpu.memory_space<vmem>>, vector<128x16xf32>
    tpu.vector_store %arg4[%c0_7, %c0_8], %17 {strides = array<i32>} : memref<128x33xf32, #tpu.memory_space<vmem>>, vector<128x16xf32>,
    %19 = math.log %14 : vector<128x1xf32>
    %20 = vector.broadcast %19 : vector<128x1xf32> to vector<128x16xf32>
    %21 = arith.subf %11, %20 : vector<128x16xf32>
    %c0_9 = arith.constant 0 : index
    %c16 = arith.constant 16 : index
    %22 = vector.load %arg4[%c0_9, %c16] : memref<128x33xf32, #tpu.memory_space<vmem>>, vector<128x16xf32>
    tpu.vector_store %arg4[%c0_9, %c16], %21 {strides = array<i32>} : memref<128x33xf32, #tpu.memory_space<vmem>>, vector<128x16xf32>,
    %23 = math.tanh %7 : vector<128x1xf32>
    %c0_10 = arith.constant 0 : index
    %c32 = arith.constant 32 : index
    %24 = vector.load %arg4[%c0_10, %c32] : memref<128x33xf32, #tpu.memory_space<vmem>>, vector<128x1xf32>
    tpu.vector_store %arg4[%c0_10, %c32], %23 {strides = array<i32>} : memref<128x33xf32, #tpu.memory_space<vmem>>, vector<128x1xf32>,
    return
  }
  func.func @transform_0(%arg0: i32) -> (i32, i32) {
    %c0_i32 = arith.constant 0 : i32
    %c0_i32_0 = arith.constant 0 : i32
    return %arg0, %c0_i32 : i32, i32
  }
  func.func @transform_1(%arg0: i32) -> (i32, i32) {
    %c0_i32 = arith.constant 0 : i32
    %c0_i32_0 = arith.constant 0 : i32
    %c0_i32_1 = arith.constant 0 : i32
    return %c0_i32, %c0_i32_0 : i32, i32
  }
  func.func @transform_2(%arg0: i32) -> (i32, i32) {
    %c0_i32 = arith.constant 0 : i32
    %c0_i32_0 = arith.constant 0 : i32
    %c0_i32_1 = arith.constant 0 : i32
    return %c0_i32, %c0_i32_0 : i32, i32
  }
  func.func @transform_3(%arg0: i32) -> (i32, i32) {
    %c0_i32 = arith.constant 0 : i32
    %c0_i32_0 = arith.constant 0 : i32
    return %arg0, %c0_i32 : i32, i32
  }
}

</mosaic_0001>

<bundles_post_ra>
// kernel: tpu_custom_call.1
= control target key start
LH: loop header
LB: loop body
LE: loop exit
PB: predicated region body
PF: predicated region fallthrough
CT: control target
= control target key end

     0   :  { %s1128_s12 = smov 0   ;;  %s1571_s0 = inlined_call_operand.vmem [shape: f32[256,32], index: 0, kind: input, shape index: {}]   ;;  %s1572_s1 = inlined_call_operand.vmem [shape: f32[32,17], index: 1, kind: input, shape index: {}]   ;;  %s1573_s2 = inlined_call_operand.vmem [shape: f32[1,17], index: 2, kind: input, shape index: {}]   ;;  %s1574_s3 = inlined_call_operand.vmem [shape: f32[256,33], index: 3, kind: output, shape index: {}]  }
   0x1 LB: > { %s870_s13 = sadd.s32 4294967295, %s1105_s12   ;;  %p874_p0 = scmp.ge.s32.totalorder %s1105_s12, 1  ;;  %s1105_s12 = sphi %s1128_s12, %s13_s12  }
   0x2   : > { %p138_p1 = scmp.lt.s32.totalorder %s1105_s12, 3 }
   0x4   : > { %p139_p2 = pnand %p874_p0, %p138_p1 }
   0x5   : > { %v190_v0 = vld [vmem:[%s1572_s1] sm:$0xff] (!%p139_p2)  ;;  %v191_v1 = vld [vmem:[%s1572_s1 + $0x8] sm:$0xff] (!%p139_p2)  ;;  %v192_v2 = vld [vmem:[%s1572_s1 + $0x10] sm:$0xff] (!%p139_p2)  ;;  %s875_s20 = sshll.u32 (!%p139_p2), %s870_s13, 4  ;;  %vm201_vm0 = vcmask (!%p139_p2), 261120   ;;  %vm395_vm1 = vcmask (!%p139_p2), 130048  }
   0x6   : > { %142 = sbr.rel (%p139_p2) target bundleno = 704 (0x2c0), region = 32  ;;  %v950_v3 = vpack.c.bf16 (!%p139_p2), %v191_v1, %v190_v0  ;;  %v193_v4 = vld [vmem:[%s1572_s1 + $0x18] sm:$0xff] (!%p139_p2)  ;;  %p163_p3 = scmp.lt.s32.totalorder (!%p139_p2), %s875_s20, 31  ;;  %v879_v22 = vld [vmem:[%s1573_s2] ss:$0 sm:$0xff] (!%p139_p2)  ;;  %vm700_vm2 = vcmask (!%p139_p2), 261248  }
   0x7   : > { %v954_v5 = vpack.c.bf16 (!%p139_p2), %v193_v4, %v192_v2  ;;  %s1107_s29 = smov (!%p139_p2), 16   ;;  %vm797_vm3 = vcmask (!%p139_p2), 269568  }
   0x8   : > { %951 = vmatprep.subr.bf16.mxu0 (!%p139_p2), %v950_v3  ;;  %958 = vmatprep.subr.bf16.mxu1 (!%p139_p2), %v950_v3 }
   0x9   : > { %953 = vmatpush3.bf16.msra.mxu0 (!%p139_p2), %v950_v3  ;;  %960 = vmatpush3.bf16.msra.mxu1 (!%p139_p2), %v950_v3 }
   0xa   : > { %955 = vmatprep.subr.bf16.mxu0 (!%p139_p2), %v954_v5  ;;  %959 = vmatprep.subr.bf16.mxu1 (!%p139_p2), %v954_v5 }
   0xd   : > { %s1576_s20 = smov (!%p163_p3, %s875_s20), 31  ;;  %957 = vmatpush3.bf16.msra.mxu0 %v954_v5  ;;  %961 = vmatpush3.bf16.msra.mxu1 %v954_v5 }
   0xe   : > { %s876_s23 = sshll.u32 %s1576_s20, 3 }
   0xf   : > { %s1156_s26 = scalar_lea.vmem %s1571_s0, %s876_s23  ;;  %s1418_s5 = scalar_lea.vmem %s1574_s3, %s876_s23 }
  0x10   : > { %v174_v6 = vld [vmem:[%s1156_s26] sm:$0xff]  ;;  %v175_v8 = vld [vmem:[%s1156_s26 + $0x8] sm:$0xff]  ;;  %v176_v10 = vld [vmem:[%s1156_s26 + $0x10] sm:$0xff] }
  0x11   : > { %v182_v7 = vld [vmem:[%s1156_s26 + $0x40] sm:$0xff]  ;;  %v183_v9 = vld [vmem:[%s1156_s26 + $0x48] sm:$0xff]  ;;  %926 = vmatprep.mubr.msk.f32.mxu0 %vm201_vm0, %v174_v6  ;;  %v184_v11 = vld [vmem:[%s1156_s26 + $0x50] sm:$0xff] }
  0x12   : > { %938 = vmatprep.mubr.msk.f32.mxu1 %vm201_vm0, %v182_v7  ;;  %927 = vmatmul.mubr.msk.f32.vlgmr.msra.gmra.mrb[0].mxu0 %vm201_vm0, %v175_v8  ;;  %v177_v12 = vld [vmem:[%s1156_s26 + $0x18] sm:$0xff]  ;;  %v178_v14 = vld [vmem:[%s1156_s26 + $0x20] sm:$0xff]  ;;  %v179_v16 = vld [vmem:[%s1156_s26 + $0x28] sm:$0xff] }
  0x13   : > { %939 = vmatmul.mubr.msk.f32.vlgmr.msra.gmra.mrb[0].mxu1 %vm201_vm0, %v183_v9  ;;  %929 = vmatprep.mubr.msk.f32.mxu0 %vm201_vm0, %v176_v10  ;;  %v185_v13 = vld [vmem:[%s1156_s26 + $0x58] sm:$0xff]  ;;  %v186_v15 = vld [vmem:[%s1156_s26 + $0x60] sm:$0xff]  ;;  %v187_v17 = vld [vmem:[%s1156_s26 + $0x68] sm:$0xff] }
  0x14   : > { %941 = vmatprep.mubr.msk.f32.mxu1 %vm201_vm0, %v184_v11  ;;  %v180_v18 = vld [vmem:[%s1156_s26 + $0x30] sm:$0xff]  ;;  %v181_v20 = vld [vmem:[%s1156_s26 + $0x38] sm:$0xff] }
  0x15   : > { %v188_v19 = vld [vmem:[%s1156_s26 + $0x70] sm:$0xff]  ;;  %v189_v21 = vld [vmem:[%s1156_s26 + $0x78] sm:$0xff] }
  0x16   : > { %930 = vmatmul.mubr.msk.f32.gmra.mrb[2].mxu0 %vm201_vm0, %v177_v12 }
  0x17   : > { %942 = vmatmul.mubr.msk.f32.gmra.mrb[2].mxu1 %vm201_vm0, %v185_v13  ;;  %932 = vmatprep.mubr.msk.f32.mxu0 %vm201_vm0, %v178_v14 }
  0x18   : > { %944 = vmatprep.mubr.msk.f32.mxu1 %vm201_vm0, %v186_v15 }
  0x1a   : > { %933 = vmatmul.mubr.msk.f32.gmra.mrb[4].mxu0 %vm201_vm0, %v179_v16 }
  0x1b   : > { %945 = vmatmul.mubr.msk.f32.gmra.mrb[4].mxu1 %vm201_vm0, %v187_v17  ;;  %935 = vmatprep.mubr.msk.f32.mxu0 %vm201_vm0, %v180_v18 }
  0x1c   : > { %947 = vmatprep.mubr.msk.f32.mxu1 %vm201_vm0, %v188_v19 }
  0x1e   : > { %936 = vmatmul.mubr.msk.f32.gmra.mrb[6].mxu0 %vm201_vm0, %v181_v20 }
  0x1f   : > { %948 = vmatmul.mubr.msk.f32.gmra.mrb[6].mxu1 %vm201_vm0, %v189_v21 }
  0xe5   : > { %v928_v23 = vpop.f32.mrb[0].mxu0 }
  0xe6   : > { %v940_v24 = vpop.f32.mrb[0].mxu1  ;;  %v1193_v25 = vadd.f32 %v928_v23, %v879_v22  ;;  %v316_v27 = vpop.f32.mrb[1].mxu0 }
  0xe7   : > { %v1195_v26 = vadd.f32 %v940_v24, %v879_v22  ;;  %v356_v28 = vpop.f32.mrb[1].mxu1  ;;  %v1197_v29 = vadd.f32 %v879_v22, %v316_v27 }
  0xe8   : > { %v399_v31 = vsel %vm395_vm1, %v1193_v25, -inf  ;;  %v1207_v38 = vadd.f32 %v879_v22, %v356_v28 }
  0xe9   : > { %v423_v30 = vsel %vm395_vm1, %v1195_v26, -inf  ;;  %400 = vmax.xlane.f32.xlu0 %v399_v31  ;;  %v931_v32 = vpop.f32.mrb[2].mxu0  ;;  %v396_v40 = vsel %vm395_vm1, %v1197_v29, -inf }
  0xea   : > { %424 = vmax.xlane.f32.xlu1 %v423_v30  ;;  %v943_v33 = vpop.f32.mrb[2].mxu1  ;;  %v1203_v34 = vadd.f32 %v931_v32, %v879_v22  ;;  %v326_v35 = vpop.f32.mrb[3].mxu0  ;;  %v420_v48 = vsel %vm395_vm1, %v1207_v38, -inf }
  0xeb   : > { %v1205_v36 = vadd.f32 %v943_v33, %v879_v22  ;;  %v366_v37 = vpop.f32.mrb[3].mxu1  ;;  %v1215_v46 = vadd.f32 %v879_v22, %v326_v35 }
  0xec   : > { %v405_v39 = vsel %vm395_vm1, %v1203_v34, -inf  ;;  %v1217_v47 = vadd.f32 %v879_v22, %v366_v37 }
  0xed   : > { %397 = vmax.xlane.f32.xlu0 %v396_v40  ;;  %v934_v41 = vpop.f32.mrb[4].mxu0  ;;  %v429_v43 = vsel %vm395_vm1, %v1205_v36, -inf  ;;  %v402_v55 = vsel %vm395_vm1, %v1215_v46, -inf }
  0xee   : > { %406 = vmax.xlane.f32.xlu1 %v405_v39  ;;  %v946_v42 = vpop.f32.mrb[4].mxu1  ;;  %v336_v44 = vpop.f32.mrb[5].mxu0  ;;  %v1221_v51 = vadd.f32 %v934_v41, %v879_v22  ;;  %v426_v56 = vsel %vm395_vm1, %v1217_v47, -inf }
  0xef   : > { %v376_v45 = vpop.f32.mrb[5].mxu1  ;;  %v1223_v52 = vadd.f32 %v879_v22, %v336_v44  ;;  %v1229_v57 = vadd.f32 %v946_v42, %v879_v22 }
  0xf0   : > { %v1231_v58 = vadd.f32 %v879_v22, %v376_v45  ;;  %v411_v59 = vsel %vm395_vm1, %v1221_v51, -inf }
  0xf1   : > { %421 = vmax.xlane.f32.xlu0 %v420_v48  ;;  %v937_v49 = vpop.f32.mrb[6].mxu0  ;;  %v408_v60 = vsel %vm395_vm1, %v1223_v52, -inf  ;;  %v435_v63 = vsel %vm395_vm1, %v1229_v57, -inf }
  0xf2   : > { %430 = vmax.xlane.f32.xlu1 %v429_v43  ;;  %v949_v50 = vpop.f32.mrb[6].mxu1  ;;  %v346_v53 = vpop.f32.mrb[7].mxu0  ;;  %v1237_v61 = vadd.f32 %v937_v49, %v879_v22  ;;  %v432_v0 = vsel %vm395_vm1, %v1231_v58, -inf }
  0xf3   : > { %v386_v54 = vpop.f32.mrb[7].mxu1  ;;  %v1239_v62 = vadd.f32 %v879_v22, %v346_v53  ;;  %v1245_v1 = vadd.f32 %v949_v50, %v879_v22 }
  0xf4   : > { %v1247_v2 = vadd.f32 %v879_v22, %v386_v54  ;;  %v417_v3 = vsel %vm395_vm1, %v1237_v61, -inf }
  0xf5   : > { %427 = vmax.xlane.f32.xlu0 %v426_v56  ;;  %v414_v4 = vsel %vm395_vm1, %v1239_v62, -inf  ;;  %v441_v5 = vsel %vm395_vm1, %v1245_v1, -inf }
  0xf6   : > { %403 = vmax.xlane.f32.xlu1 %v402_v55  ;;  %v438_v6 = vsel %vm395_vm1, %v1247_v2, -inf }
  0xf9   : > { %409 = vmax.xlane.f32.xlu0 %v408_v60 }
  0xfa   : > { %412 = vmax.xlane.f32.xlu1 %v411_v59 }
  0xfd   : > { %433 = vmax.xlane.f32.xlu0 %v432_v0 }
  0xfe   : > { %436 = vmax.xlane.f32.xlu1 %v435_v63 }
 0x101   : > { %415 = vmax.xlane.f32.xlu0 %v414_v4 }
 0x102   : > { %418 = vmax.xlane.f32.xlu1 %v417_v3 }
 0x105   : > { %439 = vmax.xlane.f32.xlu0 %v438_v6 }
 0x106   : > { %442 = vmax.xlane.f32.xlu1 %v441_v5 }
 0x176   : > { %v401_v8 = vpop.xlane.xlu0 %400 }
 0x177   : > { %v425_v7 = vpop.xlane.xlu1 %424  ;;  %v1261_v10 = vsub.f32 %v1193_v25, %v401_v8 }
 0x178   : > { %v1258_v9 = vsub.f32 %v1195_v26, %v425_v7 }
 0x179   : > { %v462_v12 = vmul.f32 1.442695, %v1261_v10 }
 0x17a   : > { %v478_v11 = vmul.f32 1.442695, %v1258_v9  ;;  %v398_v14 = vpop.xlane.xlu0 %397 }
 0x17b   : > { %v407_v13 = vpop.xlane.xlu1 %406  ;;  %v1269_v16 = vsub.f32 %v1197_v29, %v398_v14  ;;  %971 = vpow2.f32 %v462_v12 }
 0x17c   : > { %v1266_v15 = vsub.f32 %v1203_v34, %v407_v13  ;;  %973 = vpow2.f32 %v478_v11 }
 0x17d   : > { %v460_v18 = vmul.f32 1.442695, %v1269_v16 }
 0x17e   : > { %v466_v17 = vmul.f32 1.442695, %v1266_v15  ;;  %v422_v20 = vpop.xlane.xlu0 %421 }
 0x17f   : > { %v431_v19 = vpop.xlane.xlu1 %430  ;;  %v1277_v22 = vsub.f32 %v1207_v38, %v422_v20  ;;  %975 = vpow2.f32 %v460_v18 }
 0x180   : > { %v1274_v21 = vsub.f32 %v1205_v36, %v431_v19  ;;  %977 = vpow2.f32 %v466_v17 }
 0x181   : > { %v476_v23 = vmul.f32 1.442695, %v1277_v22 }
 0x182   : > { %v482_v24 = vmul.f32 1.442695, %v1274_v21  ;;  %v428_v28 = vpop.xlane.xlu0 %427 }
 0x183   : > { %v404_v27 = vpop.xlane.xlu1 %403  ;;  %v1285_v31 = vsub.f32 %v1217_v47, %v428_v28  ;;  %979 = vpow2.f32 %v476_v23 }
 0x184   : > { %v1282_v30 = vsub.f32 %v1215_v46, %v404_v27  ;;  %981 = vpow2.f32 %v482_v24 }
 0x185   : > { %v1288_v33 = vpop.eup %971  ;;  %v480_v35 = vmul.f32 1.442695, %v1285_v31 }
 0x186   : > { %v464_v32 = vmul.f32 1.442695, %v1282_v30  ;;  %v410_v39 = vpop.xlane.xlu0 %409  ;;  %v1291_v40 = vpop.eup %973  ;;  %v495_v43 = vsel %vm395_vm1, %v1288_v33, 0.0 }
 0x187   : > { %v413_v37 = vpop.xlane.xlu1 %412  ;;  %v1297_v42 = vsub.f32 %v1223_v52, %v410_v39  ;;  %496 = vadd.xlane.f32.xlu1 %v495_v43  ;;  %v519_v53 = vsel %vm395_vm1, %v1291_v40, 0.0 }
 0x188   : > { %983 = vpow2.f32 %v464_v32  ;;  %v1294_v41 = vsub.f32 %v1221_v51, %v413_v37 }
 0x189   : > { %v1302_v45 = vpop.eup %975  ;;  %985 = vpow2.f32 %v480_v35  ;;  %v468_v48 = vmul.f32 1.442695, %v1297_v42 }
 0x18a   : > { %v470_v44 = vmul.f32 1.442695, %v1294_v41  ;;  %v434_v50 = vpop.xlane.xlu0 %433  ;;  %v1307_v54 = vpop.eup %977  ;;  %v492_v59 = vsel %vm395_vm1, %v1302_v45, 0.0 }
 0x18b   : > { %v437_v49 = vpop.xlane.xlu1 %436  ;;  %v1313_v56 = vsub.f32 %v1231_v58, %v434_v50  ;;  %520 = vadd.xlane.f32.xlu1 %v519_v53  ;;  %493 = vadd.xlane.f32.xlu0 %v492_v59  ;;  %v501_v5 = vsel %vm395_vm1, %v1307_v54, 0.0 }
 0x18c   : > { %987 = vpow2.f32 %v470_v44  ;;  %v1310_v55 = vsub.f32 %v1229_v57, %v437_v49 }
 0x18d   : > { %v1318_v63 = vpop.eup %979  ;;  %989 = vpow2.f32 %v468_v48  ;;  %v484_v0 = vmul.f32 1.442695, %v1313_v56 }
 0x18e   : > { %v486_v60 = vmul.f32 1.442695, %v1310_v55  ;;  %v416_v4 = vpop.xlane.xlu0 %415  ;;  %v516_v8 = vsel %vm395_vm1, %v1318_v63, 0.0  ;;  %v1331_v11 = vpop.eup %981 }
 0x18f   : > { %v419_v3 = vpop.xlane.xlu1 %418  ;;  %v1327_v7 = vsub.f32 %v1239_v62, %v416_v4  ;;  %502 = vadd.xlane.f32.xlu1 %v501_v5  ;;  %517 = vadd.xlane.f32.xlu0 %v516_v8  ;;  %v525_v24 = vsel %vm395_vm1, %v1331_v11, 0.0 }
 0x190   : > { %991 = vpow2.f32 %v486_v60  ;;  %v1324_v6 = vsub.f32 %v1237_v61, %v419_v3 }
 0x191   : > { %993 = vpow2.f32 %v484_v0  ;;  %v472_v14 = vmul.f32 1.442695, %v1327_v7 }
 0x192   : > { %v1333_v12 = vpop.eup %983  ;;  %v474_v13 = vmul.f32 1.442695, %v1324_v6  ;;  %v440_v18 = vpop.xlane.xlu0 %439 }
 0x193   : > { %v443_v17 = vpop.xlane.xlu1 %442  ;;  %v498_v19 = vsel %vm395_vm1, %v1333_v12, 0.0  ;;  %v1343_v23 = vsub.f32 %v1247_v2, %v440_v18  ;;  %v1347_v27 = vpop.eup %985  ;;  %526 = vadd.xlane.f32.xlu1 %v525_v24 }
 0x194   : > { %995 = vpow2.f32 %v474_v13  ;;  %v1340_v20 = vsub.f32 %v1245_v1, %v443_v17  ;;  %499 = vadd.xlane.f32.xlu0 %v498_v19  ;;  %v522_v39 = vsel %vm395_vm1, %v1347_v27, 0.0 }
 0x195   : > { %997 = vpow2.f32 %v472_v14  ;;  %v488_v35 = vmul.f32 1.442695, %v1343_v23 }
 0x196   : > { %v1349_v28 = vpop.eup %987  ;;  %v490_v32 = vmul.f32 1.442695, %v1340_v20 }
 0x197   : > { %v507_v37 = vsel %vm395_vm1, %v1349_v28, 0.0  ;;  %v1357_v43 = vpop.eup %989 }
 0x198   : > { %999 = vpow2.f32 %v490_v32  ;;  %508 = vadd.xlane.f32.xlu1 %v507_v37  ;;  %523 = vadd.xlane.f32.xlu0 %v522_v39  ;;  %v504_v49 = vsel %vm395_vm1, %v1357_v43, 0.0 }
 0x199   : > { %1001 = vpow2.f32 %v488_v35 }
 0x19a   : > { %v1359_v44 = vpop.eup %991  ;;  %1003 = vtanh.f32 %v1193_v25 }
 0x19b   : > { %v531_v48 = vsel %vm395_vm1, %v1359_v44, 0.0  ;;  %v1365_v50 = vpop.eup %993  ;;  %1005 = vtanh.f32 %v1203_v34 }
 0x19c   : > { %532 = vadd.xlane.f32.xlu1 %v531_v48  ;;  %505 = vadd.xlane.f32.xlu0 %v504_v49  ;;  %v528_v60 = vsel %vm395_vm1, %v1365_v50, 0.0  ;;  %1007 = vtanh.f32 %v1221_v51 }
 0x19d   : > { %1009 = vtanh.f32 %v1197_v29 }
 0x19e   : > { %v1367_v53 = vpop.eup %995  ;;  %1011 = vtanh.f32 %v1237_v61 }
 0x19f   : > { %v513_v59 = vsel %vm395_vm1, %v1367_v53, 0.0  ;;  %v1373_v0 = vpop.eup %997  ;;  %1013 = vtanh.f32 %v1215_v46 }
 0x1a0   : > { %514 = vadd.xlane.f32.xlu1 %v513_v59  ;;  %529 = vadd.xlane.f32.xlu0 %v528_v60  ;;  %v510_v5 = vsel %vm395_vm1, %v1373_v0, 0.0  ;;  %1015 = vtanh.f32 %v1195_v26 }
 0x1a1   : > { %1017 = vtanh.f32 %v1223_v52 }
 0x1a2   : > { %v1375_v3 = vpop.eup %999  ;;  %1019 = vtanh.f32 %v1205_v36 }
 0x1a3   : > { %v537_v4 = vsel %vm395_vm1, %v1375_v3, 0.0  ;;  %v1381_v8 = vpop.eup %1001  ;;  %1021 = vtanh.f32 %v1239_v62 }
 0x1a4   : > { %538 = vadd.xlane.f32.xlu1 %v537_v4  ;;  %511 = vadd.xlane.f32.xlu0 %v510_v5  ;;  %v534_v13 = vsel %vm395_vm1, %v1381_v8, 0.0  ;;  %v1004_v14 = vpop.eup %1003  ;;  %1023 = vtanh.f32 %v1229_v57 }
 0x1a5   : > { %v1006_v17 = vpop.eup %1005  ;;  %1025 = vtanh.f32 %v1207_v38 }
 0x1a6   : > { %v1008_v25 = vpop.eup %1007  ;;  %1027 = vtanh.f32 %v1217_v47 }
 0x1a7   : > { %v1010_v34 = vpop.eup %1009  ;;  %1029 = vtanh.f32 %v1231_v58 }
 0x1a8   : > { %535 = vadd.xlane.f32.xlu0 %v534_v13  ;;  %v1012_v29 = vpop.eup %1011 }
 0x1a9   : > { %v1014_v51 = vpop.eup %1013 }
 0x1aa   : > { %v1016_v26 = vpop.eup %1015 }
 0x1ab   : > { %v1018_v46 = vpop.eup %1017 }
 0x1ac   : > { %v1020_v36 = vpop.eup %1019 }
 0x1ad   : > { %v1022_v52 = vpop.eup %1021 }
 0x1ae   : > { %v1024_v57 = vpop.eup %1023 }
 0x1af   : > { %v1026_v61 = vpop.eup %1025 }
 0x1b0   : > { %v1028_v38 = vpop.eup %1027 }
 0x1b1   : > { %v1030_v62 = vpop.eup %1029 }
 0x1b5   : > { %751 = vrot.lane.b32.xlu1 %v1004_v14, %s1107_s29 }
 0x1b9   : > { %755 = vrot.lane.b32.xlu1 %v1006_v17, %s1107_s29 }
 0x1bd   : > { %759 = vrot.lane.b32.xlu1 %v1008_v25, %s1107_s29 }
 0x1be   : > { %749 = vrot.lane.b32.xlu0 %v1010_v34, %s1107_s29 }
 0x1c1   : > { %763 = vrot.lane.b32.xlu1 %v1012_v29, %s1107_s29 }
 0x1c2   : > { %753 = vrot.lane.b32.xlu0 %v1014_v51, %s1107_s29 }
 0x1c5   : > { %767 = vrot.lane.b32.xlu1 %v1016_v26, %s1107_s29 }
 0x1c6   : > { %757 = vrot.lane.b32.xlu0 %v1018_v46, %s1107_s29 }
 0x1c9   : > { %771 = vrot.lane.b32.xlu1 %v1020_v36, %s1107_s29 }
 0x1ca   : > { %761 = vrot.lane.b32.xlu0 %v1022_v52, %s1107_s29 }
 0x1cd   : > { %775 = vrot.lane.b32.xlu1 %v1024_v57, %s1107_s29 }
 0x1ce   : > { %765 = vrot.lane.b32.xlu0 %v1026_v61, %s1107_s29 }
 0x1d2   : > { %769 = vrot.lane.b32.xlu0 %v1028_v38, %s1107_s29 }
 0x1d6   : > { %773 = vrot.lane.b32.xlu0 %v1030_v62, %s1107_s29 }
 0x214   : > { %v497_v47 = vpop.xlane.xlu1 %496 }
 0x215   : > { %1031 = vrcp.f32 %v497_v47 }
 0x216   : > { %1033 = vlog2.f32 %v497_v47 }
 0x218   : > { %v521_v18 = vpop.xlane.xlu1 %520  ;;  %v494_v19 = vpop.xlane.xlu0 %493 }
 0x219   : > { %1035 = vrcp.f32 %v521_v18 }
 0x21a   : > { %1037 = vlog2.f32 %v521_v18 }
 0x21b   : > { %1039 = vrcp.f32 %v494_v19 }
 0x21c   : > { %1041 = vlog2.f32 %v494_v19  ;;  %v503_v58 = vpop.xlane.xlu1 %502  ;;  %v518_v24 = vpop.xlane.xlu0 %517 }
 0x21d   : > { %1043 = vrcp.f32 %v503_v58 }
 0x21e   : > { %1045 = vlog2.f32 %v503_v58 }
 0x21f   : > { %v1032_v32 = vpop.eup %1031  ;;  %1047 = vrcp.f32 %v518_v24 }
 0x220   : > { %v1034_v35 = vpop.eup %1033  ;;  %1049 = vlog2.f32 %v518_v24  ;;  %v527_v37 = vpop.xlane.xlu1 %526  ;;  %v557_v48 = vmul.f32 %v1032_v32, %v1288_v33 }
 0x221   : > { %v500_v39 = vpop.xlane.xlu0 %499  ;;  %v591_v49 = vmul.f32 0.6931472, %v1034_v35  ;;  %1051 = vrcp.f32 %v527_v37 }
 0x222   : > { %1053 = vlog2.f32 %v527_v37  ;;  %573 = vst.msk [vmem:[%s1418_s5 + $0x8] sm:$0xff] %vm395_vm1, %v557_v48 }
 0x223   : > { %v1036_v59 = vpop.eup %1035  ;;  %1055 = vrcp.f32 %v500_v39  ;;  %v621_v60 = vsub.f32 %v1261_v10, %v591_v49 }
 0x224   : > { %v1038_v4 = vpop.eup %1037  ;;  %1057 = vlog2.f32 %v500_v39  ;;  %v565_v14 = vmul.f32 %v1036_v59, %v1291_v40 }
 0x225   : > { %v509_v5 = vpop.xlane.xlu1 %508  ;;  %v524_v13 = vpop.xlane.xlu0 %523  ;;  %v607_v25 = vmul.f32 0.6931472, %v1038_v4  ;;  %654 = vrot.lane.b32.xlu1 %v621_v60, %s1107_s29 }
 0x226   : > { %v1040_v17 = vpop.eup %1039  ;;  %1059 = vrcp.f32 %v509_v5  ;;  %581 = vst.msk [vmem:[%s1418_s5 + $0x48] sm:$0xff] %vm395_vm1, %v565_v14 }
 0x227   : > { %v1042_v33 = vpop.eup %1041  ;;  %1061 = vlog2.f32 %v509_v5  ;;  %v556_v34 = vmul.f32 %v1040_v17, %v1302_v45  ;;  %v629_v51 = vsub.f32 %v1258_v9, %v607_v25 }
 0x228   : > { %v1044_v29 = vpop.eup %1043  ;;  %v589_v10 = vmul.f32 0.6931472, %v1042_v33  ;;  %1063 = vrcp.f32 %v524_v13 }
 0x229   : > { %v1046_v26 = vpop.eup %1045  ;;  %1065 = vlog2.f32 %v524_v13  ;;  %v533_v40 = vpop.xlane.xlu1 %532  ;;  %572 = vst.msk [vmem:[%s1418_s5] sm:$0xff] %vm395_vm1, %v556_v34  ;;  %v559_v36 = vmul.f32 %v1044_v29, %v1307_v54  ;;  %670 = vrot.lane.b32.xlu1 %v629_v51, %s1107_s29 }
 0x22a   : > { %v506_v46 = vpop.xlane.xlu0 %505  ;;  %v1048_v52 = vpop.eup %1047  ;;  %v595_v57 = vmul.f32 0.6931472, %v1046_v26  ;;  %1067 = vrcp.f32 %v533_v40  ;;  %v620_v45 = vsub.f32 %v1269_v16, %v589_v10 }
 0x22b   : > { %v1050_v61 = vpop.eup %1049  ;;  %1069 = vlog2.f32 %v533_v40  ;;  %575 = vst.msk [vmem:[%s1418_s5 + $0x18] sm:$0xff] %vm395_vm1, %v559_v36  ;;  %v564_v9 = vmul.f32 %v1048_v52, %v1318_v63 }
 0x22c   : > { %v1052_v38 = vpop.eup %1051  ;;  %v605_v62 = vmul.f32 0.6931472, %v1050_v61  ;;  %652 = vrot.lane.b32.xlu0 %v620_v45, %s1107_s29  ;;  %1071 = vrcp.f32 %v506_v46  ;;  %v623_v54 = vsub.f32 %v1266_v15, %v595_v57 }
 0x22d   : > { %v1054_v47 = vpop.eup %1053  ;;  %1073 = vlog2.f32 %v506_v46  ;;  %v515_v18 = vpop.xlane.xlu1 %514  ;;  %580 = vst.msk [vmem:[%s1418_s5 + $0x40] sm:$0xff] %vm395_vm1, %v564_v9  ;;  %v567_v16 = vmul.f32 %v1052_v38, %v1331_v11 }
 0x22e   : > { %v530_v19 = vpop.xlane.xlu0 %529  ;;  %v1056_v58 = vpop.eup %1055  ;;  %v611_v24 = vmul.f32 0.6931472, %v1054_v47  ;;  %658 = vrot.lane.b32.xlu1 %v623_v54, %s1107_s29  ;;  %1075 = vrcp.f32 %v515_v18  ;;  %v628_v63 = vsub.f32 %v1277_v22, %v605_v62 }
 0x22f   : > { %v1058_v32 = vpop.eup %1057  ;;  %1077 = vlog2.f32 %v515_v18  ;;  %583 = vst.msk [vmem:[%s1418_s5 + $0x58] sm:$0xff] %vm395_vm1, %v567_v16  ;;  %v558_v15 = vmul.f32 %v1056_v58, %v1333_v12 }
 0x230   : > { %v1060_v35 = vpop.eup %1059  ;;  %v593_v37 = vmul.f32 0.6931472, %v1058_v32  ;;  %668 = vrot.lane.b32.xlu0 %v628_v63, %s1107_s29  ;;  %1079 = vrcp.f32 %v530_v19  ;;  %v631_v11 = vsub.f32 %v1274_v21, %v611_v24 }
 0x231   : > { %v1062_v39 = vpop.eup %1061  ;;  %1081 = vlog2.f32 %v530_v19  ;;  %v539_v48 = vpop.xlane.xlu1 %538  ;;  %574 = vst.msk [vmem:[%s1418_s5 + $0x10] sm:$0xff] %vm395_vm1, %v558_v15  ;;  %v561_v22 = vmul.f32 %v1060_v35, %v1349_v28 }
 0x232   : > { %v512_v49 = vpop.xlane.xlu0 %511  ;;  %v1064_v59 = vpop.eup %1063  ;;  %674 = vrot.lane.b32.xlu1 %v631_v11, %s1107_s29  ;;  %1083 = vrcp.f32 %v539_v48  ;;  %v599_v4 = vmul.f32 0.6931472, %v1062_v39  ;;  %v622_v13 = vsub.f32 %v1282_v30, %v593_v37 }
 0x233   : > { %v1066_v12 = vpop.eup %1065  ;;  %1085 = vlog2.f32 %v539_v48  ;;  %v566_v60 = vmul.f32 %v1064_v59, %v1347_v27  ;;  %577 = vst.msk [vmem:[%s1418_s5 + $0x28] sm:$0xff] %vm395_vm1, %v561_v22 }
 0x234   : > { %v1068_v21 = vpop.eup %1067  ;;  %v609_v5 = vmul.f32 0.6931472, %v1066_v12  ;;  %1087 = vrcp.f32 %v512_v49 }
 0x235   : > { %v1070_v14 = vpop.eup %1069  ;;  %1089 = vlog2.f32 %v512_v49  ;;  %582 = vst.msk [vmem:[%s1418_s5 + $0x50] sm:$0xff] %vm395_vm1, %v566_v60  ;;  %v569_v17 = vmul.f32 %v1068_v21, %v1359_v44  ;;  %v625_v44 = vsub.f32 %v1294_v41, %v599_v4  ;;  %v752_v18 = vpop.permute.xlu1 %751 }
 0x236   : > { %v536_v28 = vpop.xlane.xlu0 %535  ;;  %v1072_v25 = vpop.eup %1071  ;;  %656 = vrot.lane.b32.xlu1 %v622_v13, %s1107_s29  ;;  %v630_v27 = vsub.f32 %v1285_v31, %v609_v5  ;;  %v615_v29 = vmul.f32 0.6931472, %v1070_v14 }
 0x237   : > { %1091 = vrcp.f32 %v536_v28  ;;  %v1074_v33 = vpop.eup %1073  ;;  %v560_v34 = vmul.f32 %v1072_v25, %v1357_v43  ;;  %585 = vst.msk [vmem:[%s1418_s5 + $0x68] sm:$0xff] %vm395_vm1, %v569_v17 }
 0x238   : > { %1093 = vlog2.f32 %v536_v28  ;;  %v1076_v30 = vpop.eup %1075  ;;  %v597_v10 = vmul.f32 0.6931472, %v1074_v33  ;;  %672 = vrot.lane.b32.xlu0 %v630_v27, %s1107_s29  ;;  %v633_v57 = vsub.f32 %v1310_v55, %v615_v29 }
 0x239   : > { %v1078_v51 = vpop.eup %1077  ;;  %576 = vst.msk [vmem:[%s1418_s5 + $0x20] sm:$0xff] %vm395_vm1, %v560_v34  ;;  %v563_v31 = vmul.f32 %v1076_v30, %v1367_v53  ;;  %1095 = vtanh.f32 %v1245_v1 }
 0x23a   : > { %v1080_v26 = vpop.eup %1079  ;;  %662 = vrot.lane.b32.xlu1 %v625_v44, %s1107_s29  ;;  %v624_v43 = vsub.f32 %v1297_v42, %v597_v10  ;;  %v603_v52 = vmul.f32 0.6931472, %v1078_v51  ;;  %1097 = vtanh.f32 %v1247_v2  ;;  %v750_v19 = vpop.permute.xlu0 %749 }
 0x23b   : > { %v1082_v40 = vpop.eup %1081  ;;  %v568_v46 = vmul.f32 %v1080_v26, %v1365_v50  ;;  %579 = vst.msk [vmem:[%s1418_s5 + $0x38] sm:$0xff] %vm395_vm1, %v563_v31 }
 0x23c   : > { %v1084_v36 = vpop.eup %1083  ;;  %v613_v41 = vmul.f32 0.6931472, %v1082_v40  ;;  %660 = vrot.lane.b32.xlu0 %v624_v43, %s1107_s29 }
 0x23d   : > { %v1086_v45 = vpop.eup %1085  ;;  %584 = vst.msk [vmem:[%s1418_s5 + $0x60] sm:$0xff] %vm395_vm1, %v568_v46  ;;  %v571_v53 = vmul.f32 %v1084_v36, %v1375_v3  ;;  %v627_v3 = vsub.f32 %v1324_v6, %v603_v52 }
 0x23e   : > { %v1088_v42 = vpop.eup %1087  ;;  %678 = vrot.lane.b32.xlu1 %v633_v57, %s1107_s29  ;;  %v632_v50 = vsub.f32 %v1313_v56, %v613_v41  ;;  %v619_v38 = vmul.f32 0.6931472, %v1086_v45  ;;  %v754_v58 = vpop.permute.xlu0 %753 }
 0x23f   : > { %v1090_v61 = vpop.eup %1089  ;;  %v562_v9 = vmul.f32 %v1088_v42, %v1373_v0  ;;  %587 = vst.msk [vmem:[%s1418_s5 + $0x78] sm:$0xff] %vm395_vm1, %v571_v53 }
 0x240   : > { %v601_v62 = vmul.f32 0.6931472, %v1090_v61  ;;  %676 = vrot.lane.b32.xlu0 %v632_v50, %s1107_s29  ;;  %v635_v0 = vsub.f32 %v1340_v20, %v619_v38 }
 0x241   : > { %v1092_v55 = vpop.eup %1091  ;;  %578 = vst.msk [vmem:[%s1418_s5 + $0x30] sm:$0xff] %vm395_vm1, %v562_v9 }
 0x242   : > { %v1094_v54 = vpop.eup %1093  ;;  %v570_v56 = vmul.f32 %v1092_v55, %v1381_v8  ;;  %666 = vrot.lane.b32.xlu1 %v627_v3, %s1107_s29  ;;  %v626_v1 = vsub.f32 %v1327_v7, %v601_v62  ;;  %v756_v7 = vpop.permute.xlu1 %755 }
 0x243   : > { %v617_v47 = vmul.f32 0.6931472, %v1094_v54  ;;  %v1096_v2 = vpop.eup %1095 }
 0x244   : > { %586 = vst.msk [vmem:[%s1418_s5 + $0x70] sm:$0xff] %vm395_vm1, %v570_v56  ;;  %664 = vrot.lane.b32.xlu0 %v626_v1, %s1107_s29  ;;  %v1098_v8 = vpop.eup %1097 }
 0x245   : > { %v634_v6 = vsub.f32 %v1343_v23, %v617_v47  ;;  %v758_v23 = vpop.permute.xlu0 %757 }
 0x246   : > { %682 = vrot.lane.b32.xlu1 %v635_v0, %s1107_s29  ;;  %v760_v16 = vpop.permute.xlu1 %759 }
 0x248   : > { %680 = vrot.lane.b32.xlu0 %v634_v6, %s1107_s29 }
 0x249   : > { %v762_v63 = vpop.permute.xlu0 %761 }
 0x24a   : > { %779 = vrot.lane.b32.xlu1 %v1096_v2, %s1107_s29  ;;  %v764_v20 = vpop.permute.xlu1 %763 }
 0x24c   : > { %777 = vrot.lane.b32.xlu0 %v1098_v8, %s1107_s29 }
 0x24d   : > { %v766_v15 = vpop.permute.xlu0 %765 }
 0x24e   : > { %v768_v24 = vpop.permute.xlu1 %767 }
 0x251   : > { %v770_v37 = vpop.permute.xlu0 %769 }
 0x252   : > { %v772_v32 = vpop.permute.xlu1 %771 }
 0x255   : > { %v774_v39 = vpop.permute.xlu0 %773 }
 0x256   : > { %v776_v35 = vpop.permute.xlu1 %775 }
 0x297   : > { %v655_v11 = vpop.permute.xlu1 %654 }
 0x298   : > { %702 = vst.msk [vmem:[%s1418_s5 + $0x8] sm:$0xff] %vm700_vm2, %v655_v11 }
 0x299   : > { %799 = vst.msk [vmem:[%s1418_s5 + $0x8] sm:$0xff] %vm797_vm3, %v752_v18 }
 0x29b   : > { %v671_v48 = vpop.permute.xlu1 %670 }
 0x29c   : > { %710 = vst.msk [vmem:[%s1418_s5 + $0x48] sm:$0xff] %vm700_vm2, %v671_v48 }
 0x29d   : > { %807 = vst.msk [vmem:[%s1418_s5 + $0x48] sm:$0xff] %vm797_vm3, %v768_v24 }
 0x29e   : > { %v653_v49 = vpop.permute.xlu0 %652 }
 0x29f   : > { %701 = vst.msk [vmem:[%s1418_s5] sm:$0xff] %vm700_vm2, %v653_v49 }
 0x2a0   : > { %798 = vst.msk [vmem:[%s1418_s5] sm:$0xff] %vm797_vm3, %v750_v19  ;;  %v659_v22 = vpop.permute.xlu1 %658 }
 0x2a1   : > { %704 = vst.msk [vmem:[%s1418_s5 + $0x18] sm:$0xff] %vm700_vm2, %v659_v22 }
 0x2a2   : > { %801 = vst.msk [vmem:[%s1418_s5 + $0x18] sm:$0xff] %vm797_vm3, %v756_v7  ;;  %v669_v59 = vpop.permute.xlu0 %668 }
 0x2a3   : > { %709 = vst.msk [vmem:[%s1418_s5 + $0x40] sm:$0xff] %vm700_vm2, %v669_v59 }
 0x2a4   : > { %806 = vst.msk [vmem:[%s1418_s5 + $0x40] sm:$0xff] %vm797_vm3, %v766_v15  ;;  %v675_v12 = vpop.permute.xlu1 %674 }
 0x2a5   : > { %712 = vst.msk [vmem:[%s1418_s5 + $0x58] sm:$0xff] %vm700_vm2, %v675_v12 }
 0x2a6   : > { %809 = vst.msk [vmem:[%s1418_s5 + $0x58] sm:$0xff] %vm797_vm3, %v772_v32 }
 0x2a8   : > { %v657_v60 = vpop.permute.xlu1 %656 }
 0x2a9   : > { %703 = vst.msk [vmem:[%s1418_s5 + $0x10] sm:$0xff] %vm700_vm2, %v657_v60 }
 0x2aa   : > { %800 = vst.msk [vmem:[%s1418_s5 + $0x10] sm:$0xff] %vm797_vm3, %v754_v58  ;;  %v673_v21 = vpop.permute.xlu0 %672 }
 0x2ab   : > { %711 = vst.msk [vmem:[%s1418_s5 + $0x50] sm:$0xff] %vm700_vm2, %v673_v21 }
 0x2ac   : > { %808 = vst.msk [vmem:[%s1418_s5 + $0x50] sm:$0xff] %vm797_vm3, %v770_v37  ;;  %v663_v4 = vpop.permute.xlu1 %662 }
 0x2ad   : > { %706 = vst.msk [vmem:[%s1418_s5 + $0x28] sm:$0xff] %vm700_vm2, %v663_v4 }
 0x2ae   : > { %803 = vst.msk [vmem:[%s1418_s5 + $0x28] sm:$0xff] %vm797_vm3, %v760_v16  ;;  %v661_v5 = vpop.permute.xlu0 %660 }
 0x2af   : > { %705 = vst.msk [vmem:[%s1418_s5 + $0x20] sm:$0xff] %vm700_vm2, %v661_v5 }
 0x2b0   : > { %802 = vst.msk [vmem:[%s1418_s5 + $0x20] sm:$0xff] %vm797_vm3, %v758_v23  ;;  %v679_v13 = vpop.permute.xlu1 %678 }
 0x2b1   : > { %714 = vst.msk [vmem:[%s1418_s5 + $0x68] sm:$0xff] %vm700_vm2, %v679_v13 }
 0x2b2   : > { %811 = vst.msk [vmem:[%s1418_s5 + $0x68] sm:$0xff] %vm797_vm3, %v776_v35  ;;  %v677_v14 = vpop.permute.xlu0 %676 }
 0x2b3   : > { %713 = vst.msk [vmem:[%s1418_s5 + $0x60] sm:$0xff] %vm700_vm2, %v677_v14 }
 0x2b4   : > { %810 = vst.msk [vmem:[%s1418_s5 + $0x60] sm:$0xff] %vm797_vm3, %v774_v39  ;;  %v667_v28 = vpop.permute.xlu1 %666 }
 0x2b5   : > { %708 = vst.msk [vmem:[%s1418_s5 + $0x38] sm:$0xff] %vm700_vm2, %v667_v28 }
 0x2b6   : > { %805 = vst.msk [vmem:[%s1418_s5 + $0x38] sm:$0xff] %vm797_vm3, %v764_v20  ;;  %v665_v17 = vpop.permute.xlu0 %664 }
 0x2b7   : > { %707 = vst.msk [vmem:[%s1418_s5 + $0x30] sm:$0xff] %vm700_vm2, %v665_v17 }
 0x2b8   : > { %804 = vst.msk [vmem:[%s1418_s5 + $0x30] sm:$0xff] %vm797_vm3, %v762_v63  ;;  %v683_v25 = vpop.permute.xlu1 %682 }
 0x2b9   : > { %716 = vst.msk [vmem:[%s1418_s5 + $0x78] sm:$0xff] %vm700_vm2, %v683_v25 }
 0x2ba   : > { %v681_v27 = vpop.permute.xlu0 %680 }
 0x2bb   : > { %715 = vst.msk [vmem:[%s1418_s5 + $0x70] sm:$0xff] %vm700_vm2, %v681_v27 }
 0x2bc   : > { %v780_v33 = vpop.permute.xlu1 %779 }
 0x2bd   : > { %813 = vst.msk [vmem:[%s1418_s5 + $0x78] sm:$0xff] %vm797_vm3, %v780_v33 }
 0x2be   : > { %v778_v34 = vpop.permute.xlu0 %777 }
 0x2bf   : > { %812 = vst.msk [vmem:[%s1418_s5 + $0x70] sm:$0xff] %vm797_vm3, %v778_v34 }
 0x2c0 PF: > { %s13_s12 = sadd.s32 1, %s1105_s12  }
 0x2c1   : > { %p10_p4 = scmp.ge.s32.totalorder %s13_s12, 4  }
 0x2c3   :  { %12 = sbr.rel (!%p10_p4) target bundleno = 1 (0x1), region = 62 }

</bundles_post_ra>
